<compile_context>
chip_gen: v7x
topology: tpu7x:2x2x1
jax: 0.10.0
libtpu: 0.0.40
codegen_flags: <defaults>
</compile_context>

<pallas_src>
import functools

import jax
import jax.numpy as jnp
from jax.experimental import pallas as pl
from jax.experimental.pallas import tpu as pltpu


# ----------------------------------------------------------------------------
# Fused per-layer kernel (single grid step).
#   xn  : (N, F_in)           node features with per-src norm folded in (X*norm)
#   w   : (D, F_in, H*F_out)  per-division weights, heads stacked along lanes
#   an  : (D, N, N)           per-division adjacency with per-dst norm folded
#                             into its rows (norm[dst] * A[d, dst, src])
#   out : (N, out_width)      merged + activated layer output, lane-dense
# ----------------------------------------------------------------------------
def _make_layer_kernel(D, H, F_out, ggcn_merge, channel_merge, activation):
    def kernel(xn_ref, w_ref, an_ref, out_ref):
        xn = xn_ref[...]                                        # (N, F_in)

        # Per division: all heads at once (heads live in the lane dimension).
        aggs = []
        for d in range(D):                                      # static, small
            wh = jnp.dot(xn, w_ref[d],
                         preferred_element_type=jnp.float32)    # (N, H*F_out)
            aggs.append(jnp.dot(an_ref[d], wh,
                                preferred_element_type=jnp.float32))

        # ggcn merge -> per-head column blocks.
        if ggcn_merge == "cat":
            heads = [
                jnp.concatenate(
                    [aggs[d][:, h * F_out:(h + 1) * F_out] for d in range(D)],
                    axis=-1)                                    # (N, D*F_out)
                for h in range(H)
            ]
        else:  # 'mean'
            m = aggs[0]
            for d in range(1, D):
                m = m + aggs[d]
            m = m * (1.0 / D)                                   # (N, H*F_out)
            heads = [m[:, h * F_out:(h + 1) * F_out] for h in range(H)]

        # Per-dst norm is already folded into `an`; just apply the activation.
        heads = [activation(hh) for hh in heads]

        # channel merge across heads.
        if channel_merge == "cat":
            out = heads[0] if H == 1 else jnp.concatenate(heads, axis=-1)
        else:  # 'mean'
            s = heads[0]
            for h in range(1, H):
                s = s + heads[h]
            out = s * (1.0 / H)

        out_ref[...] = out
    return kernel


def geom_gcn_layer(x, w_heads, a_norm, norm, ggcn_merge, channel_merge,
                   activation):
    """x: (N, F_in); w_heads: (H, D, F_in, F_out); a_norm: (D, N, N) with
    per-dst norm folded in; norm: (N, 1)."""
    H, D, F_in, F_out = w_heads.shape
    N = x.shape[0]

    xn = x * norm                                            # fold per-src norm
    # Regroup weights: heads stacked along the output (lane) axis, per division.
    w_all = jnp.transpose(w_heads, (1, 2, 0, 3)).reshape(D, F_in, H * F_out)

    g_mult = D if ggcn_merge == "cat" else 1
    c_mult = H if channel_merge == "cat" else 1
    out_width = F_out * g_mult * c_mult

    kernel = _make_layer_kernel(D, H, F_out, ggcn_merge, channel_merge,
                                activation)
    return pl.pallas_call(
        kernel,
        out_shape=jax.ShapeDtypeStruct((N, out_width), jnp.float32),
        grid=(1,),
        in_specs=[
            pl.BlockSpec((N, F_in), lambda i: (0, 0)),
            pl.BlockSpec((D, F_in, H * F_out), lambda i: (0, 0, 0)),
            pl.BlockSpec((D, N, N), lambda i: (0, 0, 0)),
        ],
        out_specs=pl.BlockSpec((N, out_width), lambda i: (0, 0)),
        compiler_params=pltpu.CompilerParams(
            dimension_semantics=("arbitrary",)),
    )(xn, w_all, a_norm)


def geom_gcn_net(features, w1, w2, a_stack, norm, cfg):
    # Fold the per-destination norm into the adjacency rows ONCE; shared by
    # both layers (row scaling commutes with cat/mean merges).
    a_norm = a_stack * norm[None, :, :]                       # (D, N, N)
    x = geom_gcn_layer(features, w1, a_norm, norm,
                       cfg["l1_ggcn_merge"], cfg["l1_channel_merge"],
                       jax.nn.relu)
    x = geom_gcn_layer(x, w2, a_norm, norm,
                       cfg["l2_ggcn_merge"], cfg["l2_channel_merge"],
                       lambda y: y)
    return x


# ----------------------------------------------------------------------------
# Deterministic parameter / graph construction.
# ----------------------------------------------------------------------------
def xavier_uniform(key, in_feats, out_feats, n_heads, n_div):
    # nn.Linear weight is (out, in); linear applies x @ W.T, so we store W.T
    # directly as (in, out). Xavier bound uses fan_in + fan_out.
    limit = jnp.sqrt(6.0 / (in_feats + out_feats))
    return jax.random.uniform(key, (n_heads, n_div, in_feats, out_feats),
                              minval=-limit, maxval=limit, dtype=jnp.float32)


if __name__ == "__main__":
    # Small problem sizes.
    N = 16                       # number of graph nodes
    num_input_features = 8
    num_hidden = 16
    num_output_classes = 4
    num_divisions = 2
    num_heads_layer_one = 2
    num_heads_layer_two = 1

    cfg = dict(
        l1_ggcn_merge="cat", l1_channel_merge="cat",
        l2_ggcn_merge="mean", l2_channel_merge="mean",
    )

    key = jax.random.PRNGKey(0)
    k_adj, k_div, k_feat, k_w1, k_w2 = jax.random.split(key, 5)

    # Deterministic random graph: edges + per-edge division assignment.
    edge_prob = jax.random.uniform(k_adj, (N, N))
    edges = (edge_prob < 0.3).astype(jnp.float32)             # edges[dst, src]
    div_assign = jax.random.randint(k_div, (N, N), 0, num_divisions)
    a_stack = jnp.stack(
        [edges * (div_assign == d).astype(jnp.float32)
         for d in range(num_divisions)], axis=0)               # (D, N, N)

    # Per-node normalization (as stored in g.ndata['norm'], shape (N, 1)).
    in_deg = edges.sum(axis=1, keepdims=True)
    norm = 1.0 / jnp.sqrt(in_deg + 1.0)

    # Node features.
    features = jax.random.normal(k_feat, (N, num_input_features),
                                 dtype=jnp.float32)

    # Layer sizes per GeomGCNNet.__init__ (cat merges multiply widths).
    l1_ggcn_mult = num_divisions if cfg["l1_ggcn_merge"] == "cat" else 1
    l1_chan_mult = num_heads_layer_one if cfg["l1_channel_merge"] == "cat" else 1
    layer2_in = num_hidden * l1_ggcn_mult * l1_chan_mult      # 16 * 2 * 2 = 64

    w1 = xavier_uniform(k_w1, num_input_features, num_hidden,
                        num_heads_layer_one, num_divisions)    # (2, 2, 8, 16)
    w2 = xavier_uniform(k_w2, layer2_in, num_output_classes,
                        num_heads_layer_two, num_divisions)    # (1, 2, 64, 4)

    run = jax.jit(functools.partial(geom_gcn_net, cfg=cfg))
    out = run(features, w1, w2, a_stack, norm)
    jax.block_until_ready(out)

    assert out.shape == (N, num_output_classes), out.shape
    assert out.dtype == jnp.float32
    print("KERNEL_OK")
</pallas_src>

<mosaic_0001>
module attributes {stable_mosaic.version = 11 : i64} {
  func.func @kernel(%arg0: i32, %arg1: memref<16x8xf32, #tpu.memory_space<vmem>>, %arg2: memref<2x8x32xf32, #tpu.memory_space<vmem>>, %arg3: memref<2x16x16xf32, #tpu.memory_space<vmem>>, %arg4: memref<16x64xf32, #tpu.memory_space<vmem>>) attributes {dimension_semantics = [#tpu.dimension_semantics<arbitrary>], iteration_bounds = array<i64: 1>, scalar_prefetch = 0 : i64, scratch_operands = 0 : i64, tpu.core_type = #tpu.core_type<tc>, window_params = [{pipeline_mode = #tpu.pipeline_mode<synchronous>, transform_indices = @transform_0, window_bounds = array<i64: 16, 8>}, {pipeline_mode = #tpu.pipeline_mode<synchronous>, transform_indices = @transform_1, window_bounds = array<i64: 2, 8, 32>}, {pipeline_mode = #tpu.pipeline_mode<synchronous>, transform_indices = @transform_2, window_bounds = array<i64: 2, 16, 16>}, {pipeline_mode = #tpu.pipeline_mode<synchronous>, transform_indices = @transform_3, window_bounds = array<i64: 16, 64>}]} {
    %c0 = arith.constant 0 : index
    %c0_0 = arith.constant 0 : index
    %0 = vector.load %arg1[%c0, %c0_0] : memref<16x8xf32, #tpu.memory_space<vmem>>, vector<16x8xf32>
    %c0_1 = arith.constant 0 : index
    %c0_2 = arith.constant 0 : index
    %c0_3 = arith.constant 0 : index
    %1 = vector.load %arg2[%c0_1, %c0_2, %c0_3] : memref<2x8x32xf32, #tpu.memory_space<vmem>>, vector<1x8x32xf32>
    %2 = vector.shape_cast %1 : vector<1x8x32xf32> to vector<8x32xf32>
    %cst = arith.constant dense<0.000000e+00> : vector<16x32xf32>
    %3 = tpu.matmul %0, %2, %cst {dimension_numbers = #tpu.dot_dimension_numbers<[1], [0], [0], [1], [0, 0, 1, 1], [], []>} : vector<16x8xf32>, vector<8x32xf32>, vector<16x32xf32> -> vector<16x32xf32>
    %c0_4 = arith.constant 0 : index
    %c0_5 = arith.constant 0 : index
    %c0_6 = arith.constant 0 : index
    %4 = vector.load %arg3[%c0_4, %c0_5, %c0_6] : memref<2x16x16xf32, #tpu.memory_space<vmem>>, vector<1x16x16xf32>
    %5 = vector.shape_cast %4 : vector<1x16x16xf32> to vector<16x16xf32>
    %cst_7 = arith.constant dense<0.000000e+00> : vector<16x32xf32>
    %6 = tpu.matmul %5, %3, %cst_7 {dimension_numbers = #tpu.dot_dimension_numbers<[1], [0], [0], [1], [0, 0, 1, 1], [], []>} : vector<16x16xf32>, vector<16x32xf32>, vector<16x32xf32> -> vector<16x32xf32>
    %c1 = arith.constant 1 : index
    %c0_8 = arith.constant 0 : index
    %c0_9 = arith.constant 0 : index
    %7 = vector.load %arg2[%c1, %c0_8, %c0_9] : memref<2x8x32xf32, #tpu.memory_space<vmem>>, vector<1x8x32xf32>
    %8 = vector.shape_cast %7 : vector<1x8x32xf32> to vector<8x32xf32>
    %cst_10 = arith.constant dense<0.000000e+00> : vector<16x32xf32>
    %9 = tpu.matmul %0, %8, %cst_10 {dimension_numbers = #tpu.dot_dimension_numbers<[1], [0], [0], [1], [0, 0, 1, 1], [], []>} : vector<16x8xf32>, vector<8x32xf32>, vector<16x32xf32> -> vector<16x32xf32>
    %c1_11 = arith.constant 1 : index
    %c0_12 = arith.constant 0 : index
    %c0_13 = arith.constant 0 : index
    %10 = vector.load %arg3[%c1_11, %c0_12, %c0_13] : memref<2x16x16xf32, #tpu.memory_space<vmem>>, vector<1x16x16xf32>
    %11 = vector.shape_cast %10 : vector<1x16x16xf32> to vector<16x16xf32>
    %cst_14 = arith.constant dense<0.000000e+00> : vector<16x32xf32>
    %12 = tpu.matmul %11, %9, %cst_14 {dimension_numbers = #tpu.dot_dimension_numbers<[1], [0], [0], [1], [0, 0, 1, 1], [], []>} : vector<16x16xf32>, vector<16x32xf32>, vector<16x32xf32> -> vector<16x32xf32>
    %13 = vector.extract_strided_slice %6 {offsets = [0, 0], sizes = [16, 16], strides = [1, 1]} : vector<16x32xf32> to vector<16x16xf32>
    %14 = vector.extract_strided_slice %12 {offsets = [0, 0], sizes = [16, 16], strides = [1, 1]} : vector<16x32xf32> to vector<16x16xf32>
    %15 = tpu.concatenate %13, %14 in 1 : vector<16x16xf32>, vector<16x16xf32> -> vector<16x32xf32>
    %16 = vector.extract_strided_slice %6 {offsets = [0, 16], sizes = [16, 16], strides = [1, 1]} : vector<16x32xf32> to vector<16x16xf32>
    %17 = vector.extract_strided_slice %12 {offsets = [0, 16], sizes = [16, 16], strides = [1, 1]} : vector<16x32xf32> to vector<16x16xf32>
    %18 = tpu.concatenate %16, %17 in 1 : vector<16x16xf32>, vector<16x16xf32> -> vector<16x32xf32>
    %cst_15 = arith.constant 0.000000e+00 : f32
    %19 = vector.broadcast %cst_15 : f32 to vector<16x32xf32>
    %20 = arith.maximumf %15, %19 : vector<16x32xf32>
    %cst_16 = arith.constant 0.000000e+00 : f32
    %21 = vector.broadcast %cst_16 : f32 to vector<16x32xf32>
    %22 = arith.maximumf %18, %21 : vector<16x32xf32>
    %23 = tpu.concatenate %20, %22 in 1 : vector<16x32xf32>, vector<16x32xf32> -> vector<16x64xf32>
    %c0_17 = arith.constant 0 : index
    %c0_18 = arith.constant 0 : index
    %24 = vector.load %arg4[%c0_17, %c0_18] : memref<16x64xf32, #tpu.memory_space<vmem>>, vector<16x64xf32>
    tpu.vector_store %arg4[%c0_17, %c0_18], %23 {strides = array<i32>} : memref<16x64xf32, #tpu.memory_space<vmem>>, vector<16x64xf32>,
    return
  }
  func.func @transform_0(%arg0: i32) -> (i32, i32) {
    %c0_i32 = arith.constant 0 : i32
    %c0_i32_0 = arith.constant 0 : i32
    %c0_i32_1 = arith.constant 0 : i32
    return %c0_i32, %c0_i32_0 : i32, i32
  }
  func.func @transform_1(%arg0: i32) -> (i32, i32, i32) {
    %c0_i32 = arith.constant 0 : i32
    %c0_i32_0 = arith.constant 0 : i32
    %c0_i32_1 = arith.constant 0 : i32
    %c0_i32_2 = arith.constant 0 : i32
    return %c0_i32, %c0_i32_0, %c0_i32_1 : i32, i32, i32
  }
  func.func @transform_2(%arg0: i32) -> (i32, i32, i32) {
    %c0_i32 = arith.constant 0 : i32
    %c0_i32_0 = arith.constant 0 : i32
    %c0_i32_1 = arith.constant 0 : i32
    %c0_i32_2 = arith.constant 0 : i32
    return %c0_i32, %c0_i32_0, %c0_i32_1 : i32, i32, i32
  }
  func.func @transform_3(%arg0: i32) -> (i32, i32) {
    %c0_i32 = arith.constant 0 : i32
    %c0_i32_0 = arith.constant 0 : i32
    %c0_i32_1 = arith.constant 0 : i32
    return %c0_i32, %c0_i32_0 : i32, i32
  }
}

module attributes {stable_mosaic.version = 11 : i64} {
  func.func @kernel(%arg0: i32, %arg1: memref<16x64xf32, #tpu.memory_space<vmem>>, %arg2: memref<2x64x4xf32, #tpu.memory_space<vmem>>, %arg3: memref<2x16x16xf32, #tpu.memory_space<vmem>>, %arg4: memref<16x4xf32, #tpu.memory_space<vmem>>) attributes {dimension_semantics = [#tpu.dimension_semantics<arbitrary>], iteration_bounds = array<i64: 1>, scalar_prefetch = 0 : i64, scratch_operands = 0 : i64, tpu.core_type = #tpu.core_type<tc>, window_params = [{pipeline_mode = #tpu.pipeline_mode<synchronous>, transform_indices = @transform_0, window_bounds = array<i64: 16, 64>}, {pipeline_mode = #tpu.pipeline_mode<synchronous>, transform_indices = @transform_1, window_bounds = array<i64: 2, 64, 4>}, {pipeline_mode = #tpu.pipeline_mode<synchronous>, transform_indices = @transform_2, window_bounds = array<i64: 2, 16, 16>}, {pipeline_mode = #tpu.pipeline_mode<synchronous>, transform_indices = @transform_3, window_bounds = array<i64: 16, 4>}]} {
    %c0 = arith.constant 0 : index
    %c0_0 = arith.constant 0 : index
    %0 = vector.load %arg1[%c0, %c0_0] : memref<16x64xf32, #tpu.memory_space<vmem>>, vector<16x64xf32>
    %c0_1 = arith.constant 0 : index
    %c0_2 = arith.constant 0 : index
    %c0_3 = arith.constant 0 : index
    %1 = vector.load %arg2[%c0_1, %c0_2, %c0_3] : memref<2x64x4xf32, #tpu.memory_space<vmem>>, vector<1x64x4xf32>
    %2 = vector.shape_cast %1 : vector<1x64x4xf32> to vector<64x4xf32>
    %cst = arith.constant dense<0.000000e+00> : vector<16x4xf32>
    %3 = tpu.matmul %0, %2, %cst {dimension_numbers = #tpu.dot_dimension_numbers<[1], [0], [0], [1], [0, 0, 1, 1], [], []>} : vector<16x64xf32>, vector<64x4xf32>, vector<16x4xf32> -> vector<16x4xf32>
    %c0_4 = arith.constant 0 : index
    %c0_5 = arith.constant 0 : index
    %c0_6 = arith.constant 0 : index
    %4 = vector.load %arg3[%c0_4, %c0_5, %c0_6] : memref<2x16x16xf32, #tpu.memory_space<vmem>>, vector<1x16x16xf32>
    %5 = vector.shape_cast %4 : vector<1x16x16xf32> to vector<16x16xf32>
    %cst_7 = arith.constant dense<0.000000e+00> : vector<16x4xf32>
    %6 = tpu.matmul %5, %3, %cst_7 {dimension_numbers = #tpu.dot_dimension_numbers<[1], [0], [0], [1], [0, 0, 1, 1], [], []>} : vector<16x16xf32>, vector<16x4xf32>, vector<16x4xf32> -> vector<16x4xf32>
    %c1 = arith.constant 1 : index
    %c0_8 = arith.constant 0 : index
    %c0_9 = arith.constant 0 : index
    %7 = vector.load %arg2[%c1, %c0_8, %c0_9] : memref<2x64x4xf32, #tpu.memory_space<vmem>>, vector<1x64x4xf32>
    %8 = vector.shape_cast %7 : vector<1x64x4xf32> to vector<64x4xf32>
    %cst_10 = arith.constant dense<0.000000e+00> : vector<16x4xf32>
    %9 = tpu.matmul %0, %8, %cst_10 {dimension_numbers = #tpu.dot_dimension_numbers<[1], [0], [0], [1], [0, 0, 1, 1], [], []>} : vector<16x64xf32>, vector<64x4xf32>, vector<16x4xf32> -> vector<16x4xf32>
    %c1_11 = arith.constant 1 : index
    %c0_12 = arith.constant 0 : index
    %c0_13 = arith.constant 0 : index
    %10 = vector.load %arg3[%c1_11, %c0_12, %c0_13] : memref<2x16x16xf32, #tpu.memory_space<vmem>>, vector<1x16x16xf32>
    %11 = vector.shape_cast %10 : vector<1x16x16xf32> to vector<16x16xf32>
    %cst_14 = arith.constant dense<0.000000e+00> : vector<16x4xf32>
    %12 = tpu.matmul %11, %9, %cst_14 {dimension_numbers = #tpu.dot_dimension_numbers<[1], [0], [0], [1], [0, 0, 1, 1], [], []>} : vector<16x16xf32>, vector<16x4xf32>, vector<16x4xf32> -> vector<16x4xf32>
    %13 = arith.addf %6, %12 : vector<16x4xf32>
    %cst_15 = arith.constant 5.000000e-01 : f32
    %14 = vector.broadcast %cst_15 : f32 to vector<16x4xf32>
    %15 = arith.mulf %13, %14 : vector<16x4xf32>
    %cst_16 = arith.constant 1.000000e+00 : f32
    %16 = vector.broadcast %cst_16 : f32 to vector<16x4xf32>
    %17 = arith.mulf %15, %16 : vector<16x4xf32>
    %c0_17 = arith.constant 0 : index
    %c0_18 = arith.constant 0 : index
    %18 = vector.load %arg4[%c0_17, %c0_18] : memref<16x4xf32, #tpu.memory_space<vmem>>, vector<16x4xf32>
    tpu.vector_store %arg4[%c0_17, %c0_18], %17 {strides = array<i32>} : memref<16x4xf32, #tpu.memory_space<vmem>>, vector<16x4xf32>,
    return
  }
  func.func @transform_0(%arg0: i32) -> (i32, i32) {
    %c0_i32 = arith.constant 0 : i32
    %c0_i32_0 = arith.constant 0 : i32
    %c0_i32_1 = arith.constant 0 : i32
    return %c0_i32, %c0_i32_0 : i32, i32
  }
  func.func @transform_1(%arg0: i32) -> (i32, i32, i32) {
    %c0_i32 = arith.constant 0 : i32
    %c0_i32_0 = arith.constant 0 : i32
    %c0_i32_1 = arith.constant 0 : i32
    %c0_i32_2 = arith.constant 0 : i32
    return %c0_i32, %c0_i32_0, %c0_i32_1 : i32, i32, i32
  }
  func.func @transform_2(%arg0: i32) -> (i32, i32, i32) {
    %c0_i32 = arith.constant 0 : i32
    %c0_i32_0 = arith.constant 0 : i32
    %c0_i32_1 = arith.constant 0 : i32
    %c0_i32_2 = arith.constant 0 : i32
    return %c0_i32, %c0_i32_0, %c0_i32_1 : i32, i32, i32
  }
  func.func @transform_3(%arg0: i32) -> (i32, i32) {
    %c0_i32 = arith.constant 0 : i32
    %c0_i32_0 = arith.constant 0 : i32
    %c0_i32_1 = arith.constant 0 : i32
    return %c0_i32, %c0_i32_0 : i32, i32
  }
}

</mosaic_0001>

<bundles_post_ra>
// kernel: geom_gcn_net.2
= control target key start
LH: loop header
LB: loop body
LE: loop exit
PB: predicated region body
PF: predicated region fallthrough
CT: control target
= control target key end

     0   :  { %vm17_vm0 = vcmask 64512   ;;  %vm101_vm1 = vcmask 130048   ;;  %s446_s26 = smov 112   ;;  %s447_s27 = smov 16   ;;  %vm376_vm2 = vcmask 261120   ;;  %vm379_vm3 = vcmask 523264   ;;  %s507_s1 = inlined_call_operand.vmem [shape: f32[2,8,32], index: 1, kind: input, shape index: {}]   ;;  %s508_s0 = inlined_call_operand.vmem [shape: f32[16,8], index: 0, kind: input, shape index: {}]   ;;  %s509_s2 = inlined_call_operand.vmem [shape: f32[2,16,16], index: 2, kind: input, shape index: {}]   ;;  %s510_s3 = inlined_call_operand.vmem [shape: f32[16,64], index: 3, kind: output, shape index: {}]  }
   0x1   :  { %v16_v0 = vld [vmem:[%s507_s1] sm:$0xff]  ;;  %v15_v2 = vld [vmem:[%s508_s0 + $0x8] sm:$0xff]  ;;  %v393_v12 = vld [vmem:[%s509_s2 + $0x10] sm:$0xff]  ;;  %s448_s28 = smov 32  }
   0x2   :  { %v14_v1 = vld [vmem:[%s508_s0] sm:$0xff]  ;;  %411 = vmatprep.subr.mxu0 %v16_v0  ;;  %v390_v3 = vld [vmem:[%s507_s1 + $0x8] sm:$0xff]  ;;  %v394_v13 = vld [vmem:[%s509_s2 + $0x18] sm:$0xff] }
   0x3   :  { %413 = vmatprep.mubr.msk.f32.mxu0 %vm17_vm0, %v14_v1  ;;  %412 = vmatpush3.msra.mxu0 %v16_v0  ;;  %v99_v4 = vld [vmem:[%s509_s2] sm:$0xff]  ;;  %v100_v10 = vld [vmem:[%s509_s2 + $0x8] sm:$0xff] }
   0x4   :  { %414 = vmatmul.mubr.msk.f32.vlgmr.msra.gmra.mrb[0].mxu0 %vm17_vm0, %v15_v2  ;;  %423 = vmatprep.subr.mxu0 %v390_v3 }
   0x5   :  { %424 = vmatpush3.msra.mxu0 %v390_v3  ;;  %425 = vmatprep.mubr.msk.f32.mxu0 %vm17_vm0, %v14_v1 }
   0x6   :  { %420 = vmatprep.mubr.msk.f32.mxu1 %vm101_vm1, %v99_v4 }
   0x8   :  { %426 = vmatmul.mubr.msk.f32.vlgmr.msra.gmra.mrb[2].mxu0 %vm17_vm0, %v15_v2 }
  0xd7   :  { %v415_v5 = vpop.f32.mrb[0].mxu0 }
  0xd8   :  { %v90_v6 = vpop.f32.mrb[1].mxu0 }
  0xd9   :  { %v435_v7 = vpack.c.bf16 %v415_v5, %v90_v6 }
  0xdb   :  { %436 = vmatprep.subr.bf16.mxu1 %v435_v7  ;;  %v427_v8 = vpop.f32.mrb[2].mxu0 }
  0xdc   :  { %438 = vmatpush3.bf16.msra.mxu1 %v435_v7  ;;  %v251_v9 = vpop.f32.mrb[3].mxu0 }
  0xdd   :  { %v439_v11 = vpack.c.bf16 %v427_v8, %v251_v9 }
  0xdf   :  { %421 = vmatmul.mubr.msk.f32.vlgmr.msra.gmra.mrb[0].mxu1 %vm101_vm1, %v100_v10  ;;  %440 = vmatprep.subr.bf16.mxu1 %v439_v11 }
  0xe0   :  { %442 = vmatpush3.bf16.msra.mxu1 %v439_v11  ;;  %432 = vmatprep.mubr.msk.f32.mxu1 %vm101_vm1, %v393_v12 }
  0xe3   :  { %433 = vmatmul.mubr.msk.f32.vlgmr.msra.gmra.mrb[2].mxu1 %vm101_vm1, %v394_v13 }
 0x1b2   :  { %v422_v14 = vpop.f32.mrb[0].mxu1 }
 0x1b3   :  { %v174_v15 = vpop.f32.mrb[1].mxu1 }
 0x1b4   :  { %356 = vrot.lane.b32.xlu0 %v174_v15, %s446_s26 }
 0x1b6   :  { %v434_v16 = vpop.f32.mrb[2].mxu1 }
 0x1b7   :  { %348 = vrot.lane.b32.xlu1 %v434_v16, %s447_s27  ;;  %v335_v17 = vpop.f32.mrb[3].mxu1 }
 0x1b8   :  { %358 = vrot.lane.b32.xlu0 %v422_v14, %s446_s26 }
 0x1bb   :  { %346 = vrot.lane.b32.xlu1 %v335_v17, %s447_s27 }
 0x226   :  { %v357_v18 = vpop.permute.xlu0 %356 }
 0x227   :  { %v362_v19 = vsel %vm101_vm1, %v357_v18, %v335_v17 }
 0x228   :  { %v366_v20 = vmax.f32 %v362_v19, 0.0 }
 0x229   :  { %v349_v24 = vpop.permute.xlu1 %348 }
 0x22a   :  { %v359_v21 = vpop.permute.xlu0 %358  ;;  %370 = vrot.lane.b32.xlu0 %v366_v20, %s448_s28  ;;  %v353_v28 = vsel %vm101_vm1, %v422_v14, %v349_v24 }
 0x22b   :  { %v363_v22 = vsel %vm101_vm1, %v359_v21, %v434_v16  ;;  %v365_v31 = vmax.f32 %v353_v28, 0.0 }
 0x22c   :  { %v367_v23 = vmax.f32 %v363_v22, 0.0 }
 0x22d   :  { %v347_v25 = vpop.permute.xlu1 %346 }
 0x22e   :  { %372 = vrot.lane.b32.xlu1 %v367_v23, %s448_s28  ;;  %v352_v26 = vsel %vm101_vm1, %v174_v15, %v347_v25 }
 0x22f   :  { %v364_v27 = vmax.f32 %v352_v26, 0.0 }
 0x29c   :  { %v371_v29 = vpop.permute.xlu0 %370 }
 0x29d   :  { %v377_v30 = vsel %vm376_vm2, %v364_v27, %v371_v29 }
 0x29e   :  { %380 = vst.msk [vmem:[%s510_s3] sm:$0xff] %vm379_vm3, %v377_v30 }
 0x2a0   :  { %v373_v32 = vpop.permute.xlu1 %372 }
 0x2a1   :  { %v378_v33 = vsel %vm376_vm2, %v365_v31, %v373_v32 }
 0x2a2   :  { %381 = vst.msk [vmem:[%s510_s3 + $0x8] sm:$0xff] %vm379_vm3, %v378_v33 }

// kernel: geom_gcn_net.3
= control target key start
LH: loop header
LB: loop body
LE: loop exit
PB: predicated region body
PF: predicated region fallthrough
CT: control target
= control target key end

     0   :  { %vm24_vm0 = vcmask 523264   ;;  %vm195_vm1 = vcmask 130048   ;;  %vm360_vm2 = vcmask 31744   ;;  %s607_s1 = inlined_call_operand.vmem [shape: f32[2,64,4], index: 1, kind: input, shape index: {}]   ;;  %s608_s0 = inlined_call_operand.vmem [shape: f32[16,64], index: 0, kind: input, shape index: {}]   ;;  %s609_s2 = inlined_call_operand.vmem [shape: f32[2,16,16], index: 2, kind: input, shape index: {}]   ;;  %s610_s3 = inlined_call_operand.vmem [shape: f32[16,4], index: 3, kind: output, shape index: {}]  }
   0x1   :  { %v16_v0 = vld [vmem:[%s607_s1] sm:$0xff]  ;;  %v17_v1 = vld [vmem:[%s607_s1 + $0x8] sm:$0xff]  ;;  %v18_v5 = vld [vmem:[%s607_s1 + $0x10] sm:$0xff] }
   0x2   :  { %v369_v2 = vld [vmem:[%s607_s1 + $0x40] sm:$0xff]  ;;  %v465_v3 = vpack.c.bf16 %v17_v1, %v16_v0  ;;  %v370_v4 = vld [vmem:[%s607_s1 + $0x48] sm:$0xff]  ;;  %v19_v6 = vld [vmem:[%s607_s1 + $0x18] sm:$0xff] }
   0x3   :  { %v481_v7 = vpack.c.bf16 %v370_v4, %v369_v2  ;;  %v469_v8 = vpack.c.bf16 %v19_v6, %v18_v5  ;;  %v371_v9 = vld [vmem:[%s607_s1 + $0x50] sm:$0xff]  ;;  %v372_v10 = vld [vmem:[%s607_s1 + $0x58] sm:$0xff]  ;;  %v20_v11 = vld [vmem:[%s607_s1 + $0x20] sm:$0xff] }
   0x4   :  { %466 = vmatprep.subr.bf16.mxu0 %v465_v3  ;;  %v485_v12 = vpack.c.bf16 %v372_v10, %v371_v9  ;;  %v21_v13 = vld [vmem:[%s607_s1 + $0x28] sm:$0xff]  ;;  %v373_v14 = vld [vmem:[%s607_s1 + $0x60] sm:$0xff]  ;;  %v22_v19 = vld [vmem:[%s607_s1 + $0x30] sm:$0xff] }
   0x5   :  { %v374_v15 = vld [vmem:[%s607_s1 + $0x68] sm:$0xff]  ;;  %482 = vmatprep.subr.bf16.mxu1 %v481_v7  ;;  %468 = vmatpush3.bf16.msra.mxu0 %v465_v3  ;;  %v473_v16 = vpack.c.bf16 %v21_v13, %v20_v11  ;;  %v14_v17 = vld [vmem:[%s608_s0] sm:$0xff]  ;;  %v23_v20 = vld [vmem:[%s607_s1 + $0x38] sm:$0xff] }
   0x6   :  { %484 = vmatpush3.bf16.msra.mxu1 %v481_v7  ;;  %470 = vmatprep.subr.bf16.mxu0 %v469_v8  ;;  %v489_v18 = vpack.c.bf16 %v374_v15, %v373_v14  ;;  %v375_v21 = vld [vmem:[%s607_s1 + $0x70] sm:$0xff]  ;;  %v376_v22 = vld [vmem:[%s607_s1 + $0x78] sm:$0xff]  ;;  %v477_v23 = vpack.c.bf16 %v23_v20, %v22_v19  ;;  %v15_v25 = vld [vmem:[%s608_s0 + $0x8] sm:$0xff] }
   0x7   :  { %486 = vmatprep.subr.bf16.mxu1 %v485_v12  ;;  %429 = vmatprep.mubr.msk.f32.mxu0 %vm24_vm0, %v14_v17  ;;  %v493_v24 = vpack.c.bf16 %v376_v22, %v375_v21  ;;  %v379_v26 = vld [vmem:[%s609_s2 + $0x10] sm:$0xff]  ;;  %v106_v27 = vld [vmem:[%s609_s2] sm:$0xff]  ;;  %v107_v34 = vld [vmem:[%s609_s2 + $0x8] sm:$0xff] }
   0x8   :  { %448 = vmatprep.mubr.msk.f32.mxu1 %vm24_vm0, %v14_v17  ;;  %v380_v35 = vld [vmem:[%s609_s2 + $0x18] sm:$0xff] }
   0x9   :  { %472 = vmatpush3.bf16.msra.mxu0 %v469_v8 }
   0xa   :  { %488 = vmatpush3.bf16.msra.mxu1 %v485_v12  ;;  %474 = vmatprep.subr.bf16.mxu0 %v473_v16 }
   0xb   :  { %490 = vmatprep.subr.bf16.mxu1 %v489_v18 }
   0xd   :  { %476 = vmatpush3.bf16.msra.mxu0 %v473_v16 }
   0xe   :  { %492 = vmatpush3.bf16.msra.mxu1 %v489_v18  ;;  %478 = vmatprep.subr.bf16.mxu0 %v477_v23 }
   0xf   :  { %494 = vmatprep.subr.bf16.mxu1 %v493_v24 }
  0x11   :  { %480 = vmatpush3.bf16.msra.mxu0 %v477_v23 }
  0x12   :  { %496 = vmatpush3.bf16.msra.mxu1 %v493_v24 }
  0x14   :  { %430 = vmatmul.mubr.msk.f32.vlgmr.msra.gmra.mrb[0].mxu0 %vm24_vm0, %v15_v25 }
  0x15   :  { %449 = vmatmul.mubr.msk.f32.vlgmr.msra.gmra.mrb[0].mxu1 %vm24_vm0, %v15_v25  ;;  %462 = vmatprep.mubr.msk.f32.mxu0 %vm195_vm1, %v106_v27 }
  0x16   :  { %455 = vmatprep.mubr.msk.f32.mxu1 %vm195_vm1, %v379_v26 }
  0xe7   :  { %v431_v28 = vpop.f32.mrb[0].mxu0 }
  0xe8   :  { %v450_v29 = vpop.f32.mrb[0].mxu1  ;;  %v97_v30 = vpop.f32.mrb[1].mxu0 }
  0xe9   :  { %v501_v31 = vpack.c.bf16 %v431_v28, %v97_v30  ;;  %v183_v32 = vpop.f32.mrb[1].mxu1 }
  0xea   :  { %v497_v33 = vpack.c.bf16 %v450_v29, %v183_v32 }
  0xeb   :  { %502 = vmatprep.subr.bf16.mxu0 %v501_v31 }
  0xec   :  { %498 = vmatprep.subr.bf16.mxu1 %v497_v33  ;;  %504 = vmatpush3.bf16.msra.mxu0 %v501_v31 }
  0xed   :  { %500 = vmatpush3.bf16.msra.mxu1 %v497_v33 }
  0xef   :  { %463 = vmatmul.mubr.msk.f32.vlgmr.msra.gmra.mrb[2].mxu0 %vm195_vm1, %v107_v34 }
  0xf0   :  { %456 = vmatmul.mubr.msk.f32.vlgmr.msra.gmra.mrb[2].mxu1 %vm195_vm1, %v380_v35 }
 0x1c2   :  { %v464_v36 = vpop.f32.mrb[2].mxu0 }
 0x1c3   :  { %v457_v37 = vpop.f32.mrb[2].mxu1  ;;  %v349_v38 = vpop.f32.mrb[3].mxu0 }
 0x1c4   :  { %v355_v39 = vadd.f32 %v464_v36, %v457_v37  ;;  %v268_v40 = vpop.f32.mrb[3].mxu1 }
 0x1c5   :  { %v350_v41 = vadd.f32 %v349_v38, %v268_v40 }
 0x1c6   :  { %v359_v42 = vmul.f32 0.5, %v355_v39 }
 0x1c7   :  { %v358_v43 = vmul.f32 0.5, %v350_v41 }
 0x1c8   :  { %362 = vst.msk [vmem:[%s610_s3 + $0x8] sm:$0xff] %vm360_vm2, %v359_v42 }
 0x1c9   :  { %361 = vst.msk [vmem:[%s610_s3] sm:$0xff] %vm360_vm2, %v358_v43 }

</bundles_post_ra>
